<compile_context>
chip_gen: v5e
topology: v5e:2x2
jax: 0.10.0
libtpu: 0.0.40
codegen_flags: <defaults>
</compile_context>

<pallas_src>
import functools

import jax
import jax.numpy as jnp
from jax.experimental import pallas as pl
from jax.experimental.pallas import tpu as pltpu

LANES = 128                       # vreg lane width
TM_MAX_BYTES = 4 * 1024 * 1024    # max bytes per input per block (~8 MiB/step for 2 inputs)
NUM_CORES = 2                     # leading "parallel" axis (sharded across TCs on v7x)
VMEM_LIMIT = 40 * 1024 * 1024     # covers 2 inputs x 2 buffers x 4 MiB + scratch


def _combined_loss_kernel(x_ref, y_ref, o_ref, acc_ref, *, alpha, n_rows):
    c = pl.program_id(0)          # core slice of the work
    i = pl.program_id(1)          # row-block step within this core's slice
    nsteps = pl.num_programs(1)
    tm = x_ref.shape[0]
    blk = c * nsteps + i          # logical global block index (may exceed last real block)

    @pl.when(i == 0)
    def _():
        acc_ref[...] = jnp.zeros_like(acc_ref)

    # Load narrow, compute wide.
    x = x_ref[...].astype(jnp.float32)
    y = y_ref[...].astype(jnp.float32)
    d = x - y
    sq = d * d
    ad = jnp.abs(d)
    # SmoothL1 (beta = 1.0): 0.5*d^2 if |d| < 1 else |d| - 0.5
    sl1 = jnp.where(ad < 1.0, 0.5 * sq, ad - 0.5)
    # Fused weighted term: alpha*mean(sq) + (1-alpha)*mean(sl1) == mean(term).
    term = alpha * sq + (1.0 - alpha) * sl1

    def accumulate(t):
        # Tree-sum the (tm,128) tile into the tiny persistent (8,128) accumulator.
        # The reshape stays within (8,128) tiles -> no data movement; the sum over
        # the leading axis is one vadd per vreg of `t`.
        acc_ref[...] += t.reshape(tm // 8, 8, LANES).sum(axis=0)

    # Steady-state blocks skip the mask entirely; only blocks touching the row
    # boundary (partial last block, or fully out-of-range blocks whose DMA was
    # clamped by the index_map) pay for the iota + compare + select.
    in_range = (blk + 1) * tm <= n_rows

    @pl.when(in_range)
    def _():
        accumulate(term)

    @pl.when(jnp.logical_not(in_range))
    def _():
        row = blk * tm + jax.lax.broadcasted_iota(jnp.int32, (tm, LANES), 0)
        accumulate(jnp.where(row < n_rows, term, 0.0))

    @pl.when(i == nsteps - 1)
    def _():
        # Dump this core's raw per-lane partials; wrapper does the final scalar reduce.
        o_ref[0] = acc_ref[...]


def _weighted_term(x, y, alpha):
    d = x.astype(jnp.float32) - y.astype(jnp.float32)
    sq = d * d
    ad = jnp.abs(d)
    sl1 = jnp.where(ad < 1.0, 0.5 * sq, ad - 0.5)
    return alpha * sq + (1.0 - alpha) * sl1


def _round_up(v, m):
    return ((v + m - 1) // m) * m


def combined_loss(outputs, targets, alpha=0.7):
    assert outputs.shape == targets.shape
    alpha = float(alpha)
    n = outputs.size
    itemsize = jnp.dtype(outputs.dtype).itemsize

    x = outputs.reshape(-1)
    y = targets.reshape(-1)

    # Lane-aligned prefix goes through the kernel; the <128-element tail (if any)
    # is folded in via a tiny JAX epilogue (no O(N) pad copy).
    main = (n // LANES) * LANES
    rows = main // LANES
    tail_sum = jnp.float32(0.0)
    if main < n:
        tail_sum = jnp.sum(_weighted_term(x[main:], y[main:], alpha))

    if rows == 0:
        return tail_sum / n

    x2 = x[:main].reshape(rows, LANES)
    y2 = y[:main].reshape(rows, LANES)

    # Row tile: multiple of the packed-sublane granule (8 f32 / 16 bf16 / 32 int8),
    # capped at ~4 MiB per input per block.
    sub = 8 * max(1, 4 // itemsize)
    tm_cap = max(sub, (TM_MAX_BYTES // (LANES * itemsize)) // sub * sub)
    tm = min(tm_cap, _round_up(rows, sub))

    nb = pl.cdiv(rows, tm)                 # real row-blocks
    nb_half = pl.cdiv(nb, NUM_CORES)       # blocks per core slice
    grid = (NUM_CORES, nb_half)

    def in_map(c, i):
        # Clamp so fully out-of-range steps re-read the last valid block; their
        # contribution is zeroed by the in-kernel row mask.
        return (jnp.minimum(c * nb_half + i, nb - 1), 0)

    kernel = functools.partial(_combined_loss_kernel, alpha=alpha, n_rows=int(rows))

    cost = pl.CostEstimate(
        flops=10 * int(main),
        transcendentals=0,
        bytes_accessed=int(main) * 2 * itemsize + NUM_CORES * 8 * LANES * 4,
    )

    partials = pl.pallas_call(
        kernel,
        out_shape=jax.ShapeDtypeStruct((NUM_CORES, 8, LANES), jnp.float32),
        grid_spec=pltpu.PrefetchScalarGridSpec(
            num_scalar_prefetch=0,
            grid=grid,
            in_specs=[
                pl.BlockSpec((tm, LANES), in_map),
                pl.BlockSpec((tm, LANES), in_map),
            ],
            out_specs=pl.BlockSpec((1, 8, LANES), lambda c, i: (c, 0, 0)),
            scratch_shapes=[pltpu.VMEM((8, LANES), jnp.float32)],
        ),
        compiler_params=pltpu.CompilerParams(
            dimension_semantics=("parallel", "arbitrary"),
            vmem_limit_bytes=VMEM_LIMIT,
        ),
        cost_estimate=cost,
    )(x2, y2)

    return (jnp.sum(partials) + tail_sum) / n


def _reference_combined_loss(outputs, targets, alpha=0.7):
    d = outputs.astype(jnp.float32) - targets.astype(jnp.float32)
    mse = jnp.mean(d * d)
    ad = jnp.abs(d)
    smooth = jnp.mean(jnp.where(ad < 1.0, 0.5 * d * d, ad - 0.5))
    return alpha * mse + (1 - alpha) * smooth


if __name__ == "__main__":
    key = jax.random.PRNGKey(0)
    k1, k2 = jax.random.split(key)
    # Small shapes consistent with a regression-style output (N, C, H, W).
    outputs = jax.random.normal(k1, (2, 4, 16, 16), dtype=jnp.float32) * 2.0
    targets = jax.random.normal(k2, (2, 4, 16, 16), dtype=jnp.float32)

    loss = combined_loss(outputs, targets, alpha=0.7)
    loss = jax.block_until_ready(loss)

    ref = _reference_combined_loss(outputs, targets, alpha=0.7)
    assert jnp.allclose(loss, ref, rtol=1e-5, atol=1e-5), (loss, ref)
    print("KERNEL_OK")
</pallas_src>

<mosaic_0001>
module attributes {stable_mosaic.version = 11 : i64} {
  func.func @_combined_loss_kernel(%arg0: i32, %arg1: i32, %arg2: memref<16x128xf32, #tpu.memory_space<vmem>>, %arg3: memref<16x128xf32, #tpu.memory_space<vmem>>, %arg4: memref<1x8x128xf32, #tpu.memory_space<vmem>>, %arg5: memref<8x128xf32, #tpu.memory_space<vmem>>) attributes {dimension_semantics = [#tpu.dimension_semantics<parallel>, #tpu.dimension_semantics<arbitrary>], iteration_bounds = array<i64: 2, 1>, scalar_prefetch = 0 : i64, scratch_operands = 1 : i64, tpu.core_type = #tpu.core_type<tc>, window_params = [{transform_indices = @transform_0, window_bounds = array<i64: 16, 128>}, {transform_indices = @transform_1, window_bounds = array<i64: 16, 128>}, {transform_indices = @transform_2, window_bounds = array<i64: 1, 8, 128>}]} {
    %c1_i32 = arith.constant 1 : i32
    %0 = arith.muli %arg0, %c1_i32 : i32
    %1 = arith.addi %0, %arg1 : i32
    %c0_i32 = arith.constant 0 : i32
    %2 = arith.cmpi eq, %arg1, %c0_i32 : i32
    %3 = arith.extui %2 : i1 to i32
    %c0_i32_0 = arith.constant 0 : i32
    %4 = arith.cmpi ne, %3, %c0_i32_0 : i32
    scf.if %4 {
      %cst_14 = arith.constant 0.000000e+00 : f32
      %33 = vector.broadcast %cst_14 : f32 to vector<8x128xf32>
      %c0_15 = arith.constant 0 : index
      %c0_16 = arith.constant 0 : index
      %34 = vector.load %arg5[%c0_15, %c0_16] : memref<8x128xf32, #tpu.memory_space<vmem>>, vector<8x128xf32>
      tpu.vector_store %arg5[%c0_15, %c0_16], %33 {strides = array<i32>} : memref<8x128xf32, #tpu.memory_space<vmem>>, vector<8x128xf32>,
    } else {
    }
    %c0 = arith.constant 0 : index
    %c0_1 = arith.constant 0 : index
    %5 = vector.load %arg2[%c0, %c0_1] : memref<16x128xf32, #tpu.memory_space<vmem>>, vector<16x128xf32>
    %c0_2 = arith.constant 0 : index
    %c0_3 = arith.constant 0 : index
    %6 = vector.load %arg3[%c0_2, %c0_3] : memref<16x128xf32, #tpu.memory_space<vmem>>, vector<16x128xf32>
    %7 = arith.subf %5, %6 : vector<16x128xf32>
    %8 = arith.mulf %7, %7 : vector<16x128xf32>
    %9 = math.absf %7 : vector<16x128xf32>
    %cst = arith.constant 1.000000e+00 : f32
    %10 = vector.broadcast %cst : f32 to vector<16x128xf32>
    %11 = arith.cmpf olt, %9, %10 : vector<16x128xf32>
    %cst_4 = arith.constant 5.000000e-01 : f32
    %12 = vector.broadcast %cst_4 : f32 to vector<16x128xf32>
    %13 = arith.mulf %12, %8 : vector<16x128xf32>
    %cst_5 = arith.constant 5.000000e-01 : f32
    %14 = vector.broadcast %cst_5 : f32 to vector<16x128xf32>
    %15 = arith.subf %9, %14 : vector<16x128xf32>
    %16 = arith.select %11, %13, %15 : vector<16x128xi1>, vector<16x128xf32>
    %cst_6 = arith.constant 0.699999988 : f32
    %17 = vector.broadcast %cst_6 : f32 to vector<16x128xf32>
    %18 = arith.mulf %17, %8 : vector<16x128xf32>
    %cst_7 = arith.constant 3.000000e-01 : f32
    %19 = vector.broadcast %cst_7 : f32 to vector<16x128xf32>
    %20 = arith.mulf %19, %16 : vector<16x128xf32>
    %21 = arith.addf %18, %20 : vector<16x128xf32>
    %c1_i32_8 = arith.constant 1 : i32
    %22 = arith.addi %1, %c1_i32_8 : i32
    %c16_i32 = arith.constant 16 : i32
    %23 = arith.muli %22, %c16_i32 : i32
    %c16_i32_9 = arith.constant 16 : i32
    %24 = arith.cmpi sle, %23, %c16_i32_9 : i32
    %25 = arith.extui %24 : i1 to i32
    %c0_i32_10 = arith.constant 0 : i32
    %26 = arith.cmpi ne, %25, %c0_i32_10 : i32
    scf.if %26 {
      %c0_14 = arith.constant 0 : index
      %c0_15 = arith.constant 0 : index
      %33 = vector.load %arg5[%c0_14, %c0_15] : memref<8x128xf32, #tpu.memory_space<vmem>>, vector<8x128xf32>
      %34 = vector.shape_cast %21 : vector<16x128xf32> to vector<2x8x128xf32>
      %cst_16 = arith.constant dense<0.000000e+00> : vector<8x128xf32>
      %35 = vector.multi_reduction <add>, %34, %cst_16 [0] : vector<2x8x128xf32> to vector<8x128xf32>
      %36 = arith.addf %33, %35 : vector<8x128xf32>
      %c0_17 = arith.constant 0 : index
      %c0_18 = arith.constant 0 : index
      %37 = vector.load %arg5[%c0_17, %c0_18] : memref<8x128xf32, #tpu.memory_space<vmem>>, vector<8x128xf32>
      tpu.vector_store %arg5[%c0_17, %c0_18], %36 {strides = array<i32>} : memref<8x128xf32, #tpu.memory_space<vmem>>, vector<8x128xf32>,
    } else {
    }
    %true = arith.constant true
    %27 = arith.xori %24, %true : i1
    %28 = arith.extui %27 : i1 to i32
    %c0_i32_11 = arith.constant 0 : i32
    %29 = arith.cmpi ne, %28, %c0_i32_11 : i32
    scf.if %29 {
      %c16_i32_14 = arith.constant 16 : i32
      %33 = arith.muli %1, %c16_i32_14 : i32
      %34 = tpu.iota {dimensions = array<i32: 0>} : vector<16x128xi32>
      %35 = vector.broadcast %33 : i32 to vector<16x128xi32>
      %36 = arith.addi %35, %34 : vector<16x128xi32>
      %c16_i32_15 = arith.constant 16 : i32
      %37 = vector.broadcast %c16_i32_15 : i32 to vector<16x128xi32>
      %38 = arith.cmpi slt, %36, %37 : vector<16x128xi32>
      %cst_16 = arith.constant 0.000000e+00 : f32
      %39 = vector.broadcast %cst_16 : f32 to vector<16x128xf32>
      %40 = arith.select %38, %21, %39 : vector<16x128xi1>, vector<16x128xf32>
      %c0_17 = arith.constant 0 : index
      %c0_18 = arith.constant 0 : index
      %41 = vector.load %arg5[%c0_17, %c0_18] : memref<8x128xf32, #tpu.memory_space<vmem>>, vector<8x128xf32>
      %42 = vector.shape_cast %40 : vector<16x128xf32> to vector<2x8x128xf32>
      %cst_19 = arith.constant dense<0.000000e+00> : vector<8x128xf32>
      %43 = vector.multi_reduction <add>, %42, %cst_19 [0] : vector<2x8x128xf32> to vector<8x128xf32>
      %44 = arith.addf %41, %43 : vector<8x128xf32>
      %c0_20 = arith.constant 0 : index
      %c0_21 = arith.constant 0 : index
      %45 = vector.load %arg5[%c0_20, %c0_21] : memref<8x128xf32, #tpu.memory_space<vmem>>, vector<8x128xf32>
      tpu.vector_store %arg5[%c0_20, %c0_21], %44 {strides = array<i32>} : memref<8x128xf32, #tpu.memory_space<vmem>>, vector<8x128xf32>,
    } else {
    }
    %c0_i32_12 = arith.constant 0 : i32
    %30 = arith.cmpi eq, %arg1, %c0_i32_12 : i32
    %31 = arith.extui %30 : i1 to i32
    %c0_i32_13 = arith.constant 0 : i32
    %32 = arith.cmpi ne, %31, %c0_i32_13 : i32
    scf.if %32 {
      %c0_14 = arith.constant 0 : index
      %c0_15 = arith.constant 0 : index
      %33 = vector.load %arg5[%c0_14, %c0_15] : memref<8x128xf32, #tpu.memory_space<vmem>>, vector<8x128xf32>
      %c0_16 = arith.constant 0 : index
      %c0_17 = arith.constant 0 : index
      %c0_18 = arith.constant 0 : index
      %34 = vector.load %arg4[%c0_16, %c0_17, %c0_18] : memref<1x8x128xf32, #tpu.memory_space<vmem>>, vector<1x8x128xf32>
      %35 = vector.shape_cast %34 : vector<1x8x128xf32> to vector<8x128xf32>
      %36 = vector.shape_cast %33 : vector<8x128xf32> to vector<1x8x128xf32>
      tpu.vector_store %arg4[%c0_16, %c0_17, %c0_18], %36 {strides = array<i32>} : memref<1x8x128xf32, #tpu.memory_space<vmem>>, vector<1x8x128xf32>,
    } else {
    }
    return
  }
  func.func @transform_0(%arg0: i32, %arg1: i32) -> (i32, i32) {
    %c1_i32 = arith.constant 1 : i32
    %0 = arith.muli %arg0, %c1_i32 : i32
    %1 = arith.addi %0, %arg1 : i32
    %c0_i32 = arith.constant 0 : i32
    %2 = arith.minsi %1, %c0_i32 : i32
    %c0_i32_0 = arith.constant 0 : i32
    %c0_i32_1 = arith.constant 0 : i32
    return %2, %c0_i32_0 : i32, i32
  }
  func.func @transform_1(%arg0: i32, %arg1: i32) -> (i32, i32) {
    %c1_i32 = arith.constant 1 : i32
    %0 = arith.muli %arg0, %c1_i32 : i32
    %1 = arith.addi %0, %arg1 : i32
    %c0_i32 = arith.constant 0 : i32
    %2 = arith.minsi %1, %c0_i32 : i32
    %c0_i32_0 = arith.constant 0 : i32
    %c0_i32_1 = arith.constant 0 : i32
    return %2, %c0_i32_0 : i32, i32
  }
  func.func @transform_2(%arg0: i32, %arg1: i32) -> (i32, i32, i32) {
    %c0_i32 = arith.constant 0 : i32
    %c0_i32_0 = arith.constant 0 : i32
    %c0_i32_1 = arith.constant 0 : i32
    return %arg0, %c0_i32, %c0_i32_0 : i32, i32, i32
  }
}

</mosaic_0001>

<bundles_post_ra>
// kernel: tpu_custom_call.1
= control target key start
LH: loop header
LB: loop body
LE: loop exit
PB: predicated region body
PF: predicated region fallthrough
CT: control target
= control target key end

     0   :  { %7 = vsyncpa [#allocation4], 0  ;;  %s924_s0 = inlined_call_operand.hbm [shape: f32[16,128], index: 0, kind: input, shape index: {}]   ;;  %s925_s1 = inlined_call_operand.hbm [shape: f32[16,128], index: 1, kind: input, shape index: {}]   ;;  %s926_s2 = inlined_call_operand.hbm [shape: f32[2,8,128], index: 2, kind: output, shape index: {}]  }
   0x1   :  { %9 = vsyncpa [#allocation4 + $0x1], 0 }
   0x2   :  { %10 = vsyncpa [#allocation7], 0 }
   0x3   :  { %12 = vsyncpa [#allocation7 + $0x1], 0 }
   0x4   :  { %13 = vsyncpa [#allocation5], 0 }
   0x5   :  { %15 = vsyncpa [#allocation5 + $0x1], 0  ;;  %s736_s9 = smov 0   ;;  %s738_s10 = smov 0  }
   0x6   :  { %s740_s11 = smov 0   ;;  %s742_s12 = smov 0  }
   0x7   :  { %s744_s13 = smov 0   ;;  %s746_s14 = smov 0  }
   0x8   :  { %s748_s15 = smov 0   ;;  %s750_s16 = smov 0  }
   0x9 LB: > { %s425_s17 = sadd.s32 4294967295, %s714_s16   ;;  %s426_s18 = sadd.s32 4294967294, %s714_s16   ;;  %s714_s16 = sphi %s750_s16, %s21_s16   ;;  %s710_s15 = sphi %s748_s15, %s938_s15   ;;  %s706_s14 = sphi %s746_s14, %s937_s14   ;;  %s702_s13 = sphi %s744_s13, %s914_s13   ;;  %s698_s12 = sphi %s742_s12, %s936_s12   ;;  %s694_s11 = sphi %s740_s11, %s935_s11   ;;  %s690_s10 = sphi %s738_s10, %s934_s10   ;;  %s686_s9 = sphi %s736_s9, %s933_s9  }
   0xa   : > { %s33_s19 = sadd.s32 1, %s710_s15  ;;  %p683_p1 = scmp.ne.s32.totalorder %s702_s13, 0 }
   0xb   : > { %p35_p0 = scmp.ge.s32.totalorder %s33_s19, 2  ;;  %p54_p2 = scmp.eq.s32.totalorder %s714_s16, 0 }
   0xc   : > { %p59_p3 = scmp.ne.s32.totalorder %s702_s13, %s698_s12  ;;  %p60_p5 = scmp.eq.s32.totalorder %s425_s17, 0 }
   0xd   : > { %s940_s19 = smov (%p35_p0, %s33_s19), 0  ;;  %p782_p4 = por %p683_p1, %p54_p2 }
   0xe   : > { %p786_p6 = por %p60_p5, %p59_p3  ;;  %s101_s22 = ssub.s32 %s710_s15, %s940_s19 }
   0xf   : > { %p102_p7 = scmp.eq.s32.totalorder %s101_s22, 0  ;;  %s104_s23 = sadd.s32 1, %s694_s11 }
  0x10   : > { %p114_p8 = scmp.ne.s32.totalorder %s694_s11, %s690_s10  ;;  %p115_p9 = scmp.eq.s32.totalorder %s425_s17, 1 }
  0x11   : > { %s794_s24 = scalar_select %p102_p7, %s694_s11, %s104_s23  }
  0x12   : > { %p120_p10 = scmp.ne.s32.totalorder %s690_s10, %s686_s9  ;;  %p121_p11 = scmp.eq.s32.totalorder %s426_s18, 1 }
  0x13   : > { %p800_p12 = por %p115_p9, %p114_p8  ;;  %p428_p13 = scmp.ge.s32.totalorder %s714_s16, 2 }
  0x14   : > { %p805_p0 = por %p121_p11, %p120_p10  ;;  %p470_p1 = scmp.lt.s32.totalorder %s714_s16, 2 }
  0x15   : > { %s154_s29 = sshll.u32 %s924_s0, 4  ;;  %s716_s30 = smov [#allocation3]   ;;  %s155_s29 = int_to_ptr.hbm [resolvable:$true] %s154_s29 }
  0x16   : > { %s156_s3 = sshll.u32 %s716_s30, 4  ;;  %p815_p2 = pnand %p470_p1, %p782_p4  ;;  %s157_s3 = int_to_ptr.vmem [resolvable:$true] %s156_s3 }
  0x17   : > { %p435_p3 = scmp.ge.s32.totalorder %s714_s16, 1  ;;  %p189_p5 = scmp.lt.s32.totalorder %s714_s16, 3 }
  0x18   : > { %s547_s5 = sshra.s32 %s155_s29, 4  ;;  %p551_p8 = pneg %p815_p2  ;;  %s548_s5 = int_to_ptr.hbm [resolvable:$true] %s547_s5 }
  0x19   : > { %s549_s6 = scalar_lea.hbm %s548_s5, 16  ;;  %s554_s12 = scalar_lea.hbm %s924_s0, 16 }
  0x1a   : > { %p550_p7 = scmp.ne.s32.totalorder %s548_s5, %s549_s6  ;;  %p556_p4 = scmp.lt.s32.totalorder %s554_s12, %s549_s6 }
  0x1c   : > { %p552_p9 = pnand %p551_p8, %p550_p7 }
  0x1e   : > { %p553_p10 = pneg %p552_p9 }
  0x20   : > { %p558_p11 = pnand %p556_p4, %p553_p10 }
  0x22   : > { %561 = shalt.err (!%p558_p11)
}
  0x23   : > { %s717_s17 = smov 128   ;;  %s718_s18 = smov 8  }
  0x24   : > { %462 = dma.hbm_to_vmem [thread:$0]  (!%p815_p2), %s155_s29, 256, %s157_s3, [#allocation4], %s717_s17, %s717_s17, %s718_s18  }
  0x25   : > { %p835_p1 = pnand %p435_p3, %p189_p5  ;;  %s179_s27 = sshll.u32 %s925_s1, 4  ;;  %s180_s27 = int_to_ptr.hbm [resolvable:$true] %s179_s27 }
  0x26   : > { %s719_s28 = smov [#allocation6]   ;;  %s577_s5 = sshra.s32 %s180_s27, 4  ;;  %s578_s5 = int_to_ptr.hbm [resolvable:$true] %s577_s5 }
  0x27   : > { %s181_s30 = sshll.u32 %s719_s28, 4  ;;  %s579_s6 = scalar_lea.hbm %s578_s5, 16  ;;  %s182_s30 = int_to_ptr.vmem [resolvable:$true] %s181_s30 }
  0x28   : > { %p580_p7 = scmp.ne.s32.totalorder %s578_s5, %s579_s6  ;;  %s584_s7 = scalar_lea.hbm %s925_s1, 16 }
  0x29   : > { %p586_p3 = scmp.lt.s32.totalorder %s584_s7, %s579_s6 }
  0x2a   : > { %p582_p9 = pnand %p580_p7, %p551_p8 }
  0x2c   : > { %p583_p10 = pneg %p582_p9 }
  0x2e   : > { %p588_p5 = pnand %p586_p3, %p583_p10 }
  0x30   : > { %591 = shalt.err (!%p588_p5)
}
  0x31   : > { %465 = dma.hbm_to_vmem [thread:$0]  (!%p815_p2), %s180_s27, 256, %s182_s30, [#allocation7], %s717_s17, %s717_s17, %s718_s18  }
  0x32   : > { %193 = sbr.rel (%p835_p1) target bundleno = 114 (0x72), region = 28  ;;  %s195_s8 = sand.u32 (!%p835_p1), 1, %s702_s13  }
  0x33   : > { %s436_s12 = sshll.u32 (!%p835_p1), %s195_s8, 4  ;;  %s196_s22 = scalar_lea.sflag (!%p835_p1), [#allocation4], %s195_s8 }
  0x34   : > { %s199_s23 = scalar_lea.vmem (!%p835_p1), [#allocation3], %s436_s12 }
  0x37   : > { %672 = dma.done.wait (%p786_p6), %s196_s22, 256  }
  0x38   : > { %674 = vsyncadd (%p786_p6), %s196_s22, 4294967040  ;;  %s206_s28 = scalar_lea.sflag [#allocation7], %s195_s8  ;;  %s209_s5 = scalar_lea.vmem [#allocation6], %s436_s12 }
  0x39   : > { %676 = dma.done.wait (%p786_p6), %s206_s28, 256  }
  0x3a   : > { %678 = vsyncadd (%p786_p6), %s206_s28, 4294967040  ;;  %s233_s4 = sand.u32 1, %s690_s10   ;;  %s451_s17 = sshll.u32 %s706_s14, 4  ;;  %v720_v0 = vmov 0.0   ;;  %v250_v1 = vld [vmem:[%s199_s23] sm:$0xff]  ;;  %v251_v2 = vld [vmem:[%s199_s23 + $0x8] sm:$0xff] }
  0x3b   : > { %s865_s18 = sshll.u32 %s233_s4, 3  ;;  %249 = vst [vmem:[#allocation2] sm:$0xff] %v720_v0  ;;  %s869_s20 = sadd.s32 16, %s451_s17  ;;  %v252_v3 = vld [vmem:[%s209_s5] sm:$0xff]  ;;  %v253_v4 = vld [vmem:[%s209_s5 + $0x8] sm:$0xff] }
  0x3c   : > { %v254_v5 = vsub.f32 %v250_v1, %v252_v3  ;;  %v255_v6 = vsub.f32 %v251_v2, %v253_v4  ;;  %s235_s21 = scalar_lea.vmem [#allocation8], %s865_s18  ;;  %p442_p6 = scmp.gt.s32.totalorder %s869_s20, 16 }
  0x3e   : > { %v256_v7 = vmul.f32 %v254_v5, %v254_v5  ;;  %v258_v8 = vand.u32 2147483647, %v254_v5  ;;  %v257_v9 = vmul.f32 %v255_v6, %v255_v6  ;;  %v259_v10 = vand.u32 2147483647, %v255_v6 }
  0x40   : > { %vm260_vm0 = vcmp.lt.f32.partialorder %v258_v8, 1.0  ;;  %v262_v11 = vmul.f32 0.5, %v256_v7  ;;  %v439_v12 = vadd.f32 -0.5, %v258_v8  ;;  %vm261_vm1 = vcmp.lt.f32.partialorder %v259_v10, 1.0 }
  0x41   : > { %v263_v13 = vmul.f32 0.5, %v257_v9  ;;  %v440_v14 = vadd.f32 -0.5, %v259_v10  ;;  %v268_v15 = vmul.f32 0.7, %v256_v7  ;;  %v269_v17 = vmul.f32 0.7, %v257_v9 }
  0x42   : > { %v266_v16 = vsel %vm260_vm0, %v262_v11, %v439_v12  ;;  %279 = sbr.rel (%p442_p6) target bundleno = 77 (0x4d), region = 44 }
  0x43   : > { %v267_v18 = vsel %vm261_vm1, %v263_v13, %v440_v14  ;;  %v270_v19 = vmul.f32 0.3, %v266_v16 }
  0x44   : > { %v271_v20 = vmul.f32 0.3, %v267_v18 }
  0x45   : > { %v272_v21 = vadd.f32 %v270_v19, %v268_v15 }
  0x46   : > { %v273_v22 = vadd.f32 %v271_v20, %v269_v17 }
  0x47   : > { %v280_v23 = vld [vmem:[#allocation2] sm:$0xff] }
  0x48   : > { %v281_v24 = vadd.f32 %v273_v22, %v272_v21 }
  0x4a   : > { %v282_v25 = vadd.f32 %v281_v24, %v280_v23 }
  0x4c   : > { %283 = vst [vmem:[#allocation2] sm:$0xff] %v282_v25 }
  0x4d PF: > { %p443_p2 = scmp.le.s32.totalorder %s869_s20, 16 }
  0x4f   : > { %287 = sbr.rel (%p443_p2) target bundleno = 99 (0x63), region = 48 }
  0x54   : > { %v289_v26 = vlaneseq  ;;  %v292_v27 = vstv %s451_s17  ;;  %v299_v34 = vld [vmem:[#allocation2] sm:$0xff] }
  0x56   : > { %v290_v28 = vshrl.u32 %v289_v26, 7 }
  0x58   : > { %v291_v29 = vadd.s32 8, %v290_v28  ;;  %v293_v30 = vadd.s32 %v292_v27, %v290_v28 }
  0x5a   : > { %v294_v31 = vadd.s32 %v292_v27, %v291_v29  ;;  %vm295_vm2 = vcmp.lt.s32.totalorder %v293_v30, 16 }
  0x5b   : > { %v297_v32 = vsel %vm295_vm2, %v272_v21, 0.0 }
  0x5c   : > { %vm296_vm3 = vcmp.lt.s32.totalorder %v294_v31, 16 }
  0x5d   : > { %v298_v33 = vsel %vm296_vm3, %v273_v22, 0.0 }
  0x5e   : > { %v300_v35 = vadd.f32 %v298_v33, %v297_v32 }
  0x60   : > { %v301_v36 = vadd.f32 %v300_v35, %v299_v34 }
  0x62   : > { %302 = vst [vmem:[#allocation2] sm:$0xff] %v301_v36 }
  0x63 PF: > { %s446_s27 = sshll.u32 %s706_s14, 3  ;;  %s321_s3 = sshll.u32 %s235_s21, 4  ;;  %s322_s3 = int_to_ptr.vmem [resolvable:$true] %s321_s3 }
  0x64   : > { %s319_s29 = scalar_lea.hbm %s926_s2, %s446_s27  ;;  %s309_s8 = scalar_lea.sflag [#allocation5], %s233_s4 }
  0x65   : > { %s323_s7 = sshll.u32 %s319_s29, 4  ;;  %s627_s28 = scalar_lea.hbm %s926_s2, 16  ;;  %s324_s7 = int_to_ptr.hbm [resolvable:$true] %s323_s7 }
  0x66   : > { %s621_s12 = sshra.s32 %s324_s7, 4  ;;  %s622_s12 = int_to_ptr.hbm [resolvable:$true] %s621_s12 }
  0x67   : > { %s623_s22 = scalar_lea.hbm %s622_s12, 8  ;;  %p628_p1 = scmp.lt.s32.totalorder %s622_s12, %s926_s2 }
  0x68   : > { %p624_p8 = scmp.ne.s32.totalorder %s622_s12, %s623_s22  ;;  %p629_p7 = scmp.lt.s32.totalorder %s627_s28, %s623_s22 }
  0x69   : > { %v306_v37 = vld [vmem:[#allocation2] sm:$0xff] }
  0x6a   : > { %307 = vst [vmem:[%s235_s21] sm:$0xff] %v306_v37  ;;  %p625_p4 = pnand %p624_p8, %p800_p12  ;;  %p630_p9 = por %p629_p7, %p628_p1 }
  0x6c   : > { %p626_p11 = pneg %p625_p4 }
  0x6e   : > { %p631_p10 = pnand %p630_p9, %p626_p11 }
  0x70   : > { %634 = shalt.err (!%p631_p10)
}
  0x71   : > { %457 = dma.vmem_to_hbm [thread:$0]  (%p800_p12), %s322_s3, 128, %s324_s7, %s309_s8  }
  0x72 PF: > { %s335_s4 = sand.u32 1, %s686_s9   ;;  %p467_p3 = pnand %p428_p13, %p805_p0 }
  0x73   : > { %s336_s18 = scalar_lea.sflag [#allocation5], %s335_s4 }
  0x74   : > { %p468_p5 = pneg %p467_p3 }
  0x76   : > { %680 = dma.done.wait (%p468_p5), %s336_s18, 128  }
  0x77   : > { %682 = vsyncadd (%p468_p5), %s336_s18, 4294967168  ;;  %s21_s16 = sadd.s32 1, %s714_s16   ;;  %s933_s9 = smov %s690_s10 }
  0x78   : > { %p18_p6 = scmp.ge.s32.totalorder %s21_s16, 4   ;;  %s934_s10 = smov %s694_s11 }
  0x79   : > { %s935_s11 = smov %s794_s24  ;;  %s936_s12 = smov %s702_s13 }
  0x7a   : > { %s914_s13 = smov 0   ;;  %s937_s14 = smov %s710_s15 }
  0x7b   : > { %s938_s15 = smov %s940_s19  ;;  %20 = sbr.rel (!%p18_p6) target bundleno = 9 (0x9), region = 102 }
  0x80   :  { %342 = vsyncpa [#allocation4], 1 }
  0x81   :  { %344 = vsyncpa [#allocation4 + $0x1], 1 }
  0x82   :  { %345 = vsyncpa [#allocation7], 1 }
  0x83   :  { %347 = vsyncpa [#allocation7 + $0x1], 1 }
  0x84   :  { %348 = vsyncpa [#allocation5], 1 }
  0x85   :  { %350 = vsyncpa [#allocation5 + $0x1], 1 }

</bundles_post_ra>
